<compile_context>
chip_gen: v7x
topology: tpu7x:2x2x1
jax: 0.10.0
libtpu: 0.0.40
codegen_flags: <defaults>
</compile_context>

<pallas_src>
import functools

import jax
import jax.numpy as jnp
from jax.experimental import pallas as pl
from jax.experimental.pallas import tpu as pltpu


def _round_up(a, m):
    return -(-a // m) * m


def _chip_info():
    """(vmem_capacity_bytes, num_tensorcores) — best effort, safe defaults."""
    vmem_cap = 64 << 20          # conservative default: v7x has 64 MiB / TC
    num_tc = 1
    try:
        info = pltpu.get_tpu_info()
        vmem_cap = int(getattr(info, "vmem_capacity_bytes", vmem_cap))
    except Exception:
        pass
    try:
        kind = jax.devices()[0].device_kind.lower()
        # Multi-TensorCore parts share the "parallel" grid axis across cores.
        if any(tag in kind for tag in ("v7", "7x", "v4", "v5p")):
            num_tc = 2
    except Exception:
        pass
    return vmem_cap, num_tc


def _plane_vmem_bytes(h, w, hp, wp, out_h, out_w, itemsize, padded):
    """Conservative per-plane VMEM footprint (accounts for (8,128) tiling)."""
    in_b = _round_up(h, 8) * _round_up(w, 128) * itemsize
    out_b = _round_up(out_h, 8) * _round_up(out_w, 128) * itemsize
    tmp_b = _round_up(out_h, 8) * _round_up(wp, 128) * 4   # f32 temporaries
    total = 2 * in_b + 2 * out_b + 3 * tmp_b                # double-buffered io
    if padded:
        total += _round_up(hp, 8) * _round_up(wp, 128) * itemsize
    return total


def _pick_plane_tile(n, per_plane_bytes, budget, num_tc):
    """Largest plane tile fitting the budget; even grid split on 2-TC chips."""
    tn = max(1, min(n, budget // max(1, per_plane_bytes)))
    if num_tc >= 2 and n >= num_tc:
        steps = int(pl.cdiv(n, tn))
        steps = max(steps, num_tc)
        steps = _round_up(steps, num_tc)     # keep both TensorCores evenly fed
        tn = int(pl.cdiv(n, steps))
    return int(tn)


def _gmaxpool_kernel(x_ref, o_ref, *scratch, kernel_size, stride, padding,
                     h, w, out_h, out_w, pad_value):
    """x_ref: (tn, h, w) natural-layout tile; o_ref: (tn, out_h, out_w)."""
    k, s, p = kernel_size, stride, padding
    hp, wp = h + 2 * p, w + 2 * p

    if p > 0:
        # Fused halo: materialise the padded tile in VMEM scratch (no extra
        # HBM pass).  Whole-tile fill keeps lowering simple; a border-only
        # fill is a possible micro-opt.
        pad_ref = scratch[0]
        pad_ref[...] = jnp.full(pad_ref.shape, pad_value, pad_ref.dtype)
        pad_ref[:, p:p + h, p:p + w] = x_ref[...]
        src = pad_ref
    else:
        src = x_ref

    # ---- H direction: k strided picks along the sublane axis + VPU max ----
    def h_slab(di):
        if s == 1:
            return src[:, pl.ds(di, out_h), :]
        return src[:, pl.ds(di, out_h, stride=s), :]

    hmax = h_slab(0)
    for di in range(1, k):
        hmax = jnp.maximum(hmax, h_slab(di))            # (tn, out_h, wp)

    tn = hmax.shape[0]
    hm2 = hmax.astype(jnp.float32).reshape(tn * out_h, wp)

    # ---- W direction: 0/1 selection matmul on the idle MXU ----------------
    # out[:, j] = max_dj hm2[:, j*s + dj].  Column j of sel_dj has a single
    # 1.0 at row j*s + dj, so the dot is an exact gather (value * 1.0 + 0s).
    rows = jax.lax.broadcasted_iota(jnp.int32, (wp, out_w), 0)
    cols = jax.lax.broadcasted_iota(jnp.int32, (wp, out_w), 1)
    res = None
    for dj in range(k):
        sel = (rows == cols * s + dj).astype(jnp.float32)
        picked = jnp.dot(hm2, sel, preferred_element_type=jnp.float32)
        res = picked if res is None else jnp.maximum(res, picked)

    o_ref[...] = res.reshape(tn, out_h, out_w).astype(o_ref.dtype)


def gmaxpool2d(x, kernel_size=2, stride=2, padding=0, vmem_tile_budget=None):
    """Group-equivariant max pool.

    x: (batch, ch, gr, h, w) -> (batch, ch, gr, h_out, w_out).
    Matches F.max_pool2d(kernel_size, stride, padding) applied to the packed
    (batch, ch*gr, h, w) tensor.
    """
    b, c, g, h, w = x.shape
    n = b * c * g
    k, s, p = int(kernel_size), int(stride), int(padding)
    hp, wp = h + 2 * p, w + 2 * p
    out_h = (hp - k) // s + 1
    out_w = (wp - k) // s + 1
    assert k >= 1 and s >= 1 and p >= 0 and out_h >= 1 and out_w >= 1

    dtype = x.dtype
    if jnp.issubdtype(dtype, jnp.floating):
        # Finite lowest value instead of -inf, so the 0/1 selection matmul
        # never produces -inf * 0 = NaN.  Identical to F.max_pool2d as long
        # as no window is all-padding (PyTorch enforces padding <= k // 2).
        pad_value = float(jnp.finfo(dtype).min)
    else:
        pad_value = int(jnp.iinfo(dtype).min)
    # TODO(synk): integer inputs ride the f32 selection matmul (exact only for
    # |x| < 2**24); inputs containing +/-inf would NaN inside that matmul.

    # Natural contiguous layout (planes, h, w): reshape only, no HBM pass —
    # this removes the two full-tensor transpose passes of the old version.
    xf = x.reshape(n, h, w)

    itemsize = jnp.dtype(dtype).itemsize
    vmem_cap, num_tc = _chip_info()
    if vmem_tile_budget is None:
        # ~16 MiB on v7x (64 MiB VMEM/TC), ~32 MiB on v5e/v6e (128 MiB).
        vmem_tile_budget = max(4 << 20, vmem_cap // 4)
    per_plane = _plane_vmem_bytes(h, w, hp, wp, out_h, out_w, itemsize, p > 0)
    tn = _pick_plane_tile(n, per_plane, int(vmem_tile_budget), num_tc)
    steps = int(pl.cdiv(n, tn))
    # TODO(synk): add a second grid axis tiling H for inputs where a single
    # plane's footprint exceeds the VMEM budget (e.g. >4k x 4k f32 images).

    in_spec_kwargs = {}
    if steps >= 3:
        # Compute per block is ~0; a 3-deep input buffer hides DMA ramp.
        in_spec_kwargs["pipeline_mode"] = pl.Buffered(3)

    kern = functools.partial(
        _gmaxpool_kernel, kernel_size=k, stride=s, padding=p,
        h=h, w=w, out_h=out_h, out_w=out_w, pad_value=pad_value)

    scratch_shapes = []
    if p > 0:
        scratch_shapes.append(pltpu.VMEM((tn, hp, wp), dtype))

    # 32 MiB on v7x (64 MiB physical), 64 MiB on v5e/v6e (128 MiB physical).
    vmem_limit_bytes = int(max(32 << 20, min(vmem_cap // 2, 100 << 20)))

    out = pl.pallas_call(
        kern,
        out_shape=jax.ShapeDtypeStruct((n, out_h, out_w), dtype),
        grid_spec=pltpu.PrefetchScalarGridSpec(
            num_scalar_prefetch=0,
            grid=(steps,),
            # Plane tile on the LEADING block dim; the last two dims are the
            # full spatial extents, so the (8,128) rule holds for any h, w.
            in_specs=[pl.BlockSpec((tn, h, w), lambda i: (i, 0, 0),
                                   **in_spec_kwargs)],
            out_specs=pl.BlockSpec((tn, out_h, out_w), lambda i: (i, 0, 0)),
            scratch_shapes=scratch_shapes,
        ),
        compiler_params=pltpu.CompilerParams(
            dimension_semantics=("parallel",),
            vmem_limit_bytes=vmem_limit_bytes,
        ),
    )(xf)

    # Any garbage planes in a partial last block stay in out-of-range output
    # planes (no cross-plane mixing anywhere in the kernel) and are clipped.
    return out.reshape(b, c, g, out_h, out_w)


def _reference(x, kernel_size=2, stride=2, padding=0):
    """Pure-JAX reference mimicking F.max_pool2d on the packed tensor."""
    b, c, g, h, w = x.shape
    xf = x.reshape(b * c * g, h, w)
    if jnp.issubdtype(x.dtype, jnp.floating):
        init = -jnp.inf
    else:
        init = jnp.iinfo(x.dtype).min
    if padding > 0:
        xf = jnp.pad(xf, ((0, 0), (padding, padding), (padding, padding)),
                     constant_values=init)
    out = jax.lax.reduce_window(
        xf, init, jax.lax.max,
        window_dimensions=(1, kernel_size, kernel_size),
        window_strides=(1, stride, stride),
        padding="VALID").astype(x.dtype)
    oh, ow = out.shape[1], out.shape[2]
    return out.reshape(b, c, g, oh, ow)


if __name__ == "__main__":
    # Primary GMaxPool2D case: batch=2, ch=4, group samples=8, spatial 16x16.
    x = jax.random.normal(jax.random.PRNGKey(0), (2, 4, 8, 16, 16),
                          dtype=jnp.float32)
    y = jax.block_until_ready(gmaxpool2d(x, kernel_size=2, stride=2, padding=0))
    y_ref = _reference(x, 2, 2, 0)
    assert y.shape == (2, 4, 8, 8, 8), y.shape
    assert jnp.allclose(y, y_ref), "mismatch vs reference (base case)"

    # Multi-step grid + partial last plane block (+ Buffered(3) input
    # pipeline): n = 2*4*40 = 320 planes with a tiny forced tile budget.
    x2 = jax.random.normal(jax.random.PRNGKey(1), (2, 4, 40, 16, 16),
                           dtype=jnp.float32)
    y2 = jax.block_until_ready(gmaxpool2d(x2, vmem_tile_budget=2 << 20))
    assert jnp.allclose(y2, _reference(x2)), "mismatch vs reference (tiled)"

    # Padded / odd-spatial path (padding=1, 15x15) — halo fused in-kernel,
    # no jnp.pad HBM pass.
    x3 = jax.random.normal(jax.random.PRNGKey(2), (2, 4, 8, 15, 15),
                           dtype=jnp.float32)
    y3 = jax.block_until_ready(gmaxpool2d(x3, kernel_size=2, stride=2,
                                          padding=1))
    assert jnp.allclose(y3, _reference(x3, 2, 2, 1)), "mismatch (padded)"

    # Larger window: kernel 3, stride 2, padding 1.
    x4 = jax.random.normal(jax.random.PRNGKey(3), (1, 2, 4, 15, 15),
                           dtype=jnp.float32)
    y4 = jax.block_until_ready(gmaxpool2d(x4, kernel_size=3, stride=2,
                                          padding=1))
    assert jnp.allclose(y4, _reference(x4, 3, 2, 1)), "mismatch (k=3)"

    print("KERNEL_OK")
</pallas_src>

<mosaic_0001>
module attributes {stable_mosaic.version = 11 : i64} {
  func.func @_gmaxpool_kernel(%arg0: i32, %arg1: memref<64x16x16xf32, #tpu.memory_space<vmem>>, %arg2: memref<64x8x8xf32, #tpu.memory_space<vmem>>) attributes {dimension_semantics = [#tpu.dimension_semantics<parallel>], iteration_bounds = array<i64: 1>, scalar_prefetch = 0 : i64, scratch_operands = 0 : i64, tpu.core_type = #tpu.core_type<tc>, window_params = [{transform_indices = @transform_0, window_bounds = array<i64: 64, 16, 16>}, {transform_indices = @transform_1, window_bounds = array<i64: 64, 8, 8>}]} {
    %c0 = arith.constant 0 : index
    %c0_0 = arith.constant 0 : index
    %c0_1 = arith.constant 0 : index
    %0 = tpu.strided_load %arg1[%c0, %c0_0, %c0_1] {strides = array<i32: 1, 2, 1>} : memref<64x16x16xf32, #tpu.memory_space<vmem>>, vector<64x8x16xf32>
    %c0_2 = arith.constant 0 : index
    %c1 = arith.constant 1 : index
    %c0_3 = arith.constant 0 : index
    %1 = tpu.strided_load %arg1[%c0_2, %c1, %c0_3] {strides = array<i32: 1, 2, 1>} : memref<64x16x16xf32, #tpu.memory_space<vmem>>, vector<64x8x16xf32>
    %2 = arith.maximumf %0, %1 : vector<64x8x16xf32>
    %3 = vector.shape_cast %2 : vector<64x8x16xf32> to vector<512x16xf32>
    %4 = tpu.iota {dimensions = array<i32: 0>} : vector<16x8xi32>
    %5 = tpu.iota {dimensions = array<i32: 1>} : vector<16x8xi32>
    %c2_i32 = arith.constant 2 : i32
    %6 = vector.broadcast %c2_i32 : i32 to vector<16x8xi32>
    %7 = arith.muli %5, %6 : vector<16x8xi32>
    %c0_i32 = arith.constant 0 : i32
    %8 = vector.broadcast %c0_i32 : i32 to vector<16x8xi32>
    %9 = arith.addi %7, %8 : vector<16x8xi32>
    %10 = arith.cmpi eq, %4, %9 : vector<16x8xi32>
    %11 = arith.extui %10 : vector<16x8xi1> to vector<16x8xi32>
    %12 = arith.sitofp %11 : vector<16x8xi32> to vector<16x8xf32>
    %cst = arith.constant dense<0.000000e+00> : vector<512x8xf32>
    %13 = tpu.matmul %3, %12, %cst {dimension_numbers = #tpu.dot_dimension_numbers<[1], [0], [0], [1], [0, 0, 1, 1], [], []>} : vector<512x16xf32>, vector<16x8xf32>, vector<512x8xf32> -> vector<512x8xf32>
    %c2_i32_4 = arith.constant 2 : i32
    %14 = vector.broadcast %c2_i32_4 : i32 to vector<16x8xi32>
    %15 = arith.muli %5, %14 : vector<16x8xi32>
    %c1_i32 = arith.constant 1 : i32
    %16 = vector.broadcast %c1_i32 : i32 to vector<16x8xi32>
    %17 = arith.addi %15, %16 : vector<16x8xi32>
    %18 = arith.cmpi eq, %4, %17 : vector<16x8xi32>
    %19 = arith.extui %18 : vector<16x8xi1> to vector<16x8xi32>
    %20 = arith.sitofp %19 : vector<16x8xi32> to vector<16x8xf32>
    %cst_5 = arith.constant dense<0.000000e+00> : vector<512x8xf32>
    %21 = tpu.matmul %3, %20, %cst_5 {dimension_numbers = #tpu.dot_dimension_numbers<[1], [0], [0], [1], [0, 0, 1, 1], [], []>} : vector<512x16xf32>, vector<16x8xf32>, vector<512x8xf32> -> vector<512x8xf32>
    %22 = arith.maximumf %13, %21 : vector<512x8xf32>
    %23 = vector.shape_cast %22 : vector<512x8xf32> to vector<64x8x8xf32>
    %c0_6 = arith.constant 0 : index
    %c0_7 = arith.constant 0 : index
    %c0_8 = arith.constant 0 : index
    %24 = vector.load %arg2[%c0_6, %c0_7, %c0_8] : memref<64x8x8xf32, #tpu.memory_space<vmem>>, vector<64x8x8xf32>
    tpu.vector_store %arg2[%c0_6, %c0_7, %c0_8], %23 {strides = array<i32>} : memref<64x8x8xf32, #tpu.memory_space<vmem>>, vector<64x8x8xf32>,
    return
  }
  func.func @transform_0(%arg0: i32) -> (i32, i32, i32) {
    %c0_i32 = arith.constant 0 : i32
    %c0_i32_0 = arith.constant 0 : i32
    %c0_i32_1 = arith.constant 0 : i32
    return %arg0, %c0_i32, %c0_i32_0 : i32, i32, i32
  }
  func.func @transform_1(%arg0: i32) -> (i32, i32, i32) {
    %c0_i32 = arith.constant 0 : i32
    %c0_i32_0 = arith.constant 0 : i32
    %c0_i32_1 = arith.constant 0 : i32
    return %arg0, %c0_i32, %c0_i32_0 : i32, i32, i32
  }
}

</mosaic_0001>

<bundles_post_ra>
// kernel: tpu_custom_call.1
= control target key start
LH: loop header
LB: loop body
LE: loop exit
PB: predicated region body
PF: predicated region fallthrough
CT: control target
= control target key end

     0   :  { %v327_v0 = vlaneseq  ;;  %vm339_vm0 = vcmask 130048   ;;  %v2046_v13 = vmov 1.0|1.0   ;;  %vm1373_vm7 = vcmask 64512   ;;  %s2825_s0 = inlined_call_operand.vmem [shape: f32[64,16,16], index: 0, kind: input, shape index: {}]   ;;  %s2826_s1 = inlined_call_operand.vmem [shape: f32[64,8,8], index: 1, kind: output, shape index: {}]  }
   0x1   :  { %v8_v1 = vld [vmem:[%s2825_s0] ss:$2 sm:$0xff]  ;;  %v1505_v2 = vld [vmem:[%s2825_s0 + $0x1] ss:$2 sm:$0xff]  ;;  %v1442_v8 = vld [vmem:[%s2825_s0 + $0x10] ss:$2 sm:$0xff] }
   0x2   :  { %v328_v3 = vshrl.u32 %v327_v0, 7  ;;  %v331_v4 = vand.u32 127, %v327_v0  ;;  %v263_v5 = vmax.f32 %v8_v1, %v1505_v2  ;;  %v1506_v9 = vld [vmem:[%s2825_s0 + $0x11] ss:$2 sm:$0xff]  ;;  %v1443_v11 = vld [vmem:[%s2825_s0 + $0x20] ss:$2 sm:$0xff] }
   0x3   :  { %v1507_v12 = vld [vmem:[%s2825_s0 + $0x21] ss:$2 sm:$0xff]  ;;  %v264_v14 = vmax.f32 %v1442_v8, %v1506_v9  ;;  %v1444_v16 = vld [vmem:[%s2825_s0 + $0x30] ss:$2 sm:$0xff]  ;;  %v1508_v17 = vld [vmem:[%s2825_s0 + $0x31] ss:$2 sm:$0xff] }
   0x4   :  { %v329_v6 = vadd.s32 8, %v328_v3  ;;  %v332_v7 = vmul.u32 2, %v331_v4  ;;  %1841 = vmatprep.mubr.msk.f32.mxu0 %vm339_vm0, %v263_v5  ;;  %1941 = vmatprep.mubr.msk.f32.mxu1 %vm339_vm0, %v263_v5  ;;  %v265_v15 = vmax.f32 %v1443_v11, %v1507_v12  ;;  %v1445_v18 = vld [vmem:[%s2825_s0 + $0x40] ss:$2 sm:$0xff]  ;;  %v1509_v19 = vld [vmem:[%s2825_s0 + $0x41] ss:$2 sm:$0xff]  ;;  %v266_v20 = vmax.f32 %v1444_v16, %v1508_v17 }
   0x5   :  { %v267_v21 = vmax.f32 %v1445_v18, %v1509_v19  ;;  %v1446_v22 = vld [vmem:[%s2825_s0 + $0x50] ss:$2 sm:$0xff]  ;;  %v1510_v23 = vld [vmem:[%s2825_s0 + $0x51] ss:$2 sm:$0xff]  ;;  %v1447_v24 = vld [vmem:[%s2825_s0 + $0x60] ss:$2 sm:$0xff] }
   0x6   :  { %vm333_vm1 = vcmp.eq.s32.totalorder %v328_v3, %v332_v7  ;;  %vm334_vm2 = vcmp.eq.s32.totalorder %v329_v6, %v332_v7  ;;  %v917_v10 = vadd.s32 1, %v332_v7  ;;  %v1511_v25 = vld [vmem:[%s2825_s0 + $0x61] ss:$2 sm:$0xff]  ;;  %v268_v26 = vmax.f32 %v1446_v22, %v1510_v23  ;;  %v1448_v28 = vld [vmem:[%s2825_s0 + $0x70] ss:$2 sm:$0xff] }
   0x7   :  { %vm2037_vm3 = vmpackc.low %vm334_vm2, %vm333_vm1  ;;  %v269_v27 = vmax.f32 %v1447_v24, %v1511_v25  ;;  %v1512_v29 = vld [vmem:[%s2825_s0 + $0x71] ss:$2 sm:$0xff]  ;;  %v1449_v30 = vld [vmem:[%s2825_s0 + $0x80] ss:$2 sm:$0xff] }
   0x8   :  { %2038 = vmatprep.subr.msk.bf16.mxu0 %vm2037_vm3, %v2046_v13  ;;  %vm918_vm4 = vcmp.eq.s32.totalorder %v328_v3, %v917_v10  ;;  %vm919_vm5 = vcmp.eq.s32.totalorder %v329_v6, %v917_v10  ;;  %v1513_v31 = vld [vmem:[%s2825_s0 + $0x81] ss:$2 sm:$0xff]  ;;  %v270_v32 = vmax.f32 %v1448_v28, %v1512_v29  ;;  %v1450_v34 = vld [vmem:[%s2825_s0 + $0x90] ss:$2 sm:$0xff]  ;;  %v1514_v35 = vld [vmem:[%s2825_s0 + $0x91] ss:$2 sm:$0xff] }
   0x9   :  { %2040 = vmatpush3.bf16.msk.msra.mxu0 %vm2037_vm3, %v2046_v13  ;;  %vm2041_vm6 = vmpackc.low %vm919_vm5, %vm918_vm4  ;;  %v271_v33 = vmax.f32 %v1449_v30, %v1513_v31  ;;  %v1451_v36 = vld [vmem:[%s2825_s0 + $0xa0] ss:$2 sm:$0xff]  ;;  %v1515_v37 = vld [vmem:[%s2825_s0 + $0xa1] ss:$2 sm:$0xff]  ;;  %v272_v38 = vmax.f32 %v1450_v34, %v1514_v35 }
   0xa   :  { %2042 = vmatprep.subr.msk.bf16.mxu1 %vm2041_vm6, %v2046_v13  ;;  %v273_v39 = vmax.f32 %v1451_v36, %v1515_v37  ;;  %v1452_v40 = vld [vmem:[%s2825_s0 + $0xb0] ss:$2 sm:$0xff]  ;;  %v1516_v41 = vld [vmem:[%s2825_s0 + $0xb1] ss:$2 sm:$0xff]  ;;  %v1453_v42 = vld [vmem:[%s2825_s0 + $0xc0] ss:$2 sm:$0xff] }
   0xb   :  { %2044 = vmatpush3.bf16.msk.msra.mxu1 %vm2041_vm6, %v2046_v13  ;;  %v1517_v43 = vld [vmem:[%s2825_s0 + $0xc1] ss:$2 sm:$0xff]  ;;  %v274_v44 = vmax.f32 %v1452_v40, %v1516_v41  ;;  %v1454_v46 = vld [vmem:[%s2825_s0 + $0xd0] ss:$2 sm:$0xff]  ;;  %v1518_v47 = vld [vmem:[%s2825_s0 + $0xd1] ss:$2 sm:$0xff] }
   0xc   :  { %1842 = vmatmul.mubr.msk.f32.vlgmr.msra.gmra.mrb[0].mxu0 %vm339_vm0, %v264_v14  ;;  %v275_v45 = vmax.f32 %v1453_v42, %v1517_v43  ;;  %v1455_v48 = vld [vmem:[%s2825_s0 + $0xe0] ss:$2 sm:$0xff]  ;;  %v1519_v49 = vld [vmem:[%s2825_s0 + $0xe1] ss:$2 sm:$0xff]  ;;  %v276_v50 = vmax.f32 %v1454_v46, %v1518_v47  ;;  %v1456_v52 = vld [vmem:[%s2825_s0 + $0xf0] ss:$2 sm:$0xff] }
   0xd   :  { %1844 = vmatprep.mubr.msk.f32.mxu0 %vm339_vm0, %v265_v15  ;;  %v277_v51 = vmax.f32 %v1455_v48, %v1519_v49  ;;  %v1520_v53 = vld [vmem:[%s2825_s0 + $0xf1] ss:$2 sm:$0xff]  ;;  %v1457_v54 = vld [vmem:[%s2825_s0 + $0x100] ss:$2 sm:$0xff]  ;;  %v1521_v55 = vld [vmem:[%s2825_s0 + $0x101] ss:$2 sm:$0xff] }
   0xe   :  { %1942 = vmatmul.mubr.msk.f32.vlgmr.msra.gmra.mrb[0].mxu1 %vm339_vm0, %v264_v14  ;;  %v278_v56 = vmax.f32 %v1456_v52, %v1520_v53  ;;  %v279_v57 = vmax.f32 %v1457_v54, %v1521_v55  ;;  %v1458_v58 = vld [vmem:[%s2825_s0 + $0x110] ss:$2 sm:$0xff]  ;;  %v1522_v59 = vld [vmem:[%s2825_s0 + $0x111] ss:$2 sm:$0xff]  ;;  %v1459_v60 = vld [vmem:[%s2825_s0 + $0x120] ss:$2 sm:$0xff] }
   0xf   :  { %1944 = vmatprep.mubr.msk.f32.mxu1 %vm339_vm0, %v265_v15  ;;  %v1523_v61 = vld [vmem:[%s2825_s0 + $0x121] ss:$2 sm:$0xff]  ;;  %v280_v62 = vmax.f32 %v1458_v58, %v1522_v59  ;;  %v1460_v0 = vld [vmem:[%s2825_s0 + $0x130] ss:$2 sm:$0xff]  ;;  %v1524_v1 = vld [vmem:[%s2825_s0 + $0x131] ss:$2 sm:$0xff] }
  0x10   :  { %1845 = vmatmul.mubr.msk.f32.gmra.mrb[2].mxu0 %vm339_vm0, %v266_v20  ;;  %v281_v63 = vmax.f32 %v1459_v60, %v1523_v61  ;;  %v1461_v2 = vld [vmem:[%s2825_s0 + $0x140] ss:$2 sm:$0xff]  ;;  %v1525_v3 = vld [vmem:[%s2825_s0 + $0x141] ss:$2 sm:$0xff]  ;;  %v282_v4 = vmax.f32 %v1460_v0, %v1524_v1  ;;  %v1462_v6 = vld [vmem:[%s2825_s0 + $0x150] ss:$2 sm:$0xff] }
  0x11   :  { %1847 = vmatprep.mubr.msk.f32.mxu0 %vm339_vm0, %v267_v21  ;;  %v283_v5 = vmax.f32 %v1461_v2, %v1525_v3  ;;  %v1526_v7 = vld [vmem:[%s2825_s0 + $0x151] ss:$2 sm:$0xff]  ;;  %v1463_v8 = vld [vmem:[%s2825_s0 + $0x160] ss:$2 sm:$0xff]  ;;  %v1527_v9 = vld [vmem:[%s2825_s0 + $0x161] ss:$2 sm:$0xff] }
  0x12   :  { %1945 = vmatmul.mubr.msk.f32.gmra.mrb[2].mxu1 %vm339_vm0, %v266_v20  ;;  %v284_v10 = vmax.f32 %v1462_v6, %v1526_v7  ;;  %v285_v11 = vmax.f32 %v1463_v8, %v1527_v9  ;;  %v1464_v12 = vld [vmem:[%s2825_s0 + $0x170] ss:$2 sm:$0xff]  ;;  %v1528_v13 = vld [vmem:[%s2825_s0 + $0x171] ss:$2 sm:$0xff]  ;;  %v1465_v14 = vld [vmem:[%s2825_s0 + $0x180] ss:$2 sm:$0xff] }
  0x13   :  { %1947 = vmatprep.mubr.msk.f32.mxu1 %vm339_vm0, %v267_v21  ;;  %v1529_v15 = vld [vmem:[%s2825_s0 + $0x181] ss:$2 sm:$0xff]  ;;  %v286_v16 = vmax.f32 %v1464_v12, %v1528_v13  ;;  %v1466_v18 = vld [vmem:[%s2825_s0 + $0x190] ss:$2 sm:$0xff]  ;;  %v1530_v19 = vld [vmem:[%s2825_s0 + $0x191] ss:$2 sm:$0xff] }
  0x14   :  { %1848 = vmatmul.mubr.msk.f32.gmra.mrb[4].mxu0 %vm339_vm0, %v268_v26  ;;  %v287_v17 = vmax.f32 %v1465_v14, %v1529_v15  ;;  %v1467_v20 = vld [vmem:[%s2825_s0 + $0x1a0] ss:$2 sm:$0xff]  ;;  %v1531_v21 = vld [vmem:[%s2825_s0 + $0x1a1] ss:$2 sm:$0xff]  ;;  %v288_v22 = vmax.f32 %v1466_v18, %v1530_v19  ;;  %v1468_v24 = vld [vmem:[%s2825_s0 + $0x1b0] ss:$2 sm:$0xff] }
  0x15   :  { %1850 = vmatprep.mubr.msk.f32.mxu0 %vm339_vm0, %v269_v27  ;;  %v289_v23 = vmax.f32 %v1467_v20, %v1531_v21  ;;  %v1532_v25 = vld [vmem:[%s2825_s0 + $0x1b1] ss:$2 sm:$0xff]  ;;  %v1470_v30 = vld [vmem:[%s2825_s0 + $0x1d0] ss:$2 sm:$0xff] }
  0x16   :  { %1948 = vmatmul.mubr.msk.f32.gmra.mrb[4].mxu1 %vm339_vm0, %v268_v26  ;;  %v1469_v26 = vld [vmem:[%s2825_s0 + $0x1c0] ss:$2 sm:$0xff]  ;;  %v290_v28 = vmax.f32 %v1468_v24, %v1532_v25  ;;  %v1534_v31 = vld [vmem:[%s2825_s0 + $0x1d1] ss:$2 sm:$0xff]  ;;  %v1472_v36 = vld [vmem:[%s2825_s0 + $0x1f0] ss:$2 sm:$0xff] }
  0x17   :  { %1950 = vmatprep.mubr.msk.f32.mxu1 %vm339_vm0, %v269_v27  ;;  %v1533_v27 = vld [vmem:[%s2825_s0 + $0x1c1] ss:$2 sm:$0xff]  ;;  %v292_v34 = vmax.f32 %v1470_v30, %v1534_v31  ;;  %v1536_v37 = vld [vmem:[%s2825_s0 + $0x1f1] ss:$2 sm:$0xff]  ;;  %v1474_v42 = vld [vmem:[%s2825_s0 + $0x210] ss:$2 sm:$0xff] }
  0x18   :  { %1851 = vmatmul.mubr.msk.f32.gmra.mrb[6].mxu0 %vm339_vm0, %v270_v32  ;;  %v291_v29 = vmax.f32 %v1469_v26, %v1533_v27  ;;  %v294_v40 = vmax.f32 %v1472_v36, %v1536_v37  ;;  %v1538_v43 = vld [vmem:[%s2825_s0 + $0x211] ss:$2 sm:$0xff]  ;;  %v1476_v48 = vld [vmem:[%s2825_s0 + $0x230] ss:$2 sm:$0xff] }
  0x19   :  { %1853 = vmatprep.mubr.msk.f32.mxu0 %vm339_vm0, %v271_v33  ;;  %v296_v46 = vmax.f32 %v1474_v42, %v1538_v43  ;;  %v1540_v49 = vld [vmem:[%s2825_s0 + $0x231] ss:$2 sm:$0xff]  ;;  %v1478_v54 = vld [vmem:[%s2825_s0 + $0x250] ss:$2 sm:$0xff] }
  0x1a   :  { %1951 = vmatmul.mubr.msk.f32.gmra.mrb[6].mxu1 %vm339_vm0, %v270_v32  ;;  %v1471_v32 = vld [vmem:[%s2825_s0 + $0x1e0] ss:$2 sm:$0xff]  ;;  %v298_v52 = vmax.f32 %v1476_v48, %v1540_v49  ;;  %v1542_v55 = vld [vmem:[%s2825_s0 + $0x251] ss:$2 sm:$0xff]  ;;  %v1480_v60 = vld [vmem:[%s2825_s0 + $0x270] ss:$2 sm:$0xff] }
  0x1b   :  { %1953 = vmatprep.mubr.msk.f32.mxu1 %vm339_vm0, %v271_v33  ;;  %v1535_v33 = vld [vmem:[%s2825_s0 + $0x1e1] ss:$2 sm:$0xff]  ;;  %v300_v58 = vmax.f32 %v1478_v54, %v1542_v55  ;;  %v1544_v61 = vld [vmem:[%s2825_s0 + $0x271] ss:$2 sm:$0xff]  ;;  %v1482_v2 = vld [vmem:[%s2825_s0 + $0x290] ss:$2 sm:$0xff] }
  0x1c   :  { %1854 = vmatmul.mubr.msk.f32.gmra.mrb[8].mxu0 %vm339_vm0, %v272_v38  ;;  %v293_v35 = vmax.f32 %v1471_v32, %v1535_v33  ;;  %v302_v0 = vmax.f32 %v1480_v60, %v1544_v61  ;;  %v1546_v3 = vld [vmem:[%s2825_s0 + $0x291] ss:$2 sm:$0xff]  ;;  %v1484_v8 = vld [vmem:[%s2825_s0 + $0x2b0] ss:$2 sm:$0xff] }
  0x1d   :  { %1856 = vmatprep.mubr.msk.f32.mxu0 %vm339_vm0, %v273_v39  ;;  %v304_v6 = vmax.f32 %v1482_v2, %v1546_v3  ;;  %v1548_v9 = vld [vmem:[%s2825_s0 + $0x2b1] ss:$2 sm:$0xff]  ;;  %v1486_v14 = vld [vmem:[%s2825_s0 + $0x2d0] ss:$2 sm:$0xff] }
  0x1e   :  { %1954 = vmatmul.mubr.msk.f32.gmra.mrb[8].mxu1 %vm339_vm0, %v272_v38  ;;  %v1473_v38 = vld [vmem:[%s2825_s0 + $0x200] ss:$2 sm:$0xff]  ;;  %v306_v12 = vmax.f32 %v1484_v8, %v1548_v9  ;;  %v1550_v15 = vld [vmem:[%s2825_s0 + $0x2d1] ss:$2 sm:$0xff]  ;;  %v1488_v20 = vld [vmem:[%s2825_s0 + $0x2f0] ss:$2 sm:$0xff] }
  0x1f   :  { %1956 = vmatprep.mubr.msk.f32.mxu1 %vm339_vm0, %v273_v39  ;;  %v1537_v39 = vld [vmem:[%s2825_s0 + $0x201] ss:$2 sm:$0xff]  ;;  %v308_v18 = vmax.f32 %v1486_v14, %v1550_v15  ;;  %v1552_v21 = vld [vmem:[%s2825_s0 + $0x2f1] ss:$2 sm:$0xff]  ;;  %v1490_v26 = vld [vmem:[%s2825_s0 + $0x310] ss:$2 sm:$0xff] }
  0x20   :  { %1857 = vmatmul.mubr.msk.f32.gmra.mrb[10].mxu0 %vm339_vm0, %v274_v44  ;;  %v295_v41 = vmax.f32 %v1473_v38, %v1537_v39  ;;  %v310_v24 = vmax.f32 %v1488_v20, %v1552_v21  ;;  %v1554_v27 = vld [vmem:[%s2825_s0 + $0x311] ss:$2 sm:$0xff]  ;;  %v1492_v32 = vld [vmem:[%s2825_s0 + $0x330] ss:$2 sm:$0xff] }
  0x21   :  { %1859 = vmatprep.mubr.msk.f32.mxu0 %vm339_vm0, %v275_v45  ;;  %v312_v30 = vmax.f32 %v1490_v26, %v1554_v27  ;;  %v1556_v33 = vld [vmem:[%s2825_s0 + $0x331] ss:$2 sm:$0xff]  ;;  %v1494_v38 = vld [vmem:[%s2825_s0 + $0x350] ss:$2 sm:$0xff] }
  0x22   :  { %1957 = vmatmul.mubr.msk.f32.gmra.mrb[10].mxu1 %vm339_vm0, %v274_v44  ;;  %v1475_v44 = vld [vmem:[%s2825_s0 + $0x220] ss:$2 sm:$0xff]  ;;  %v314_v36 = vmax.f32 %v1492_v32, %v1556_v33  ;;  %v1558_v39 = vld [vmem:[%s2825_s0 + $0x351] ss:$2 sm:$0xff] }
  0x23   :  { %1959 = vmatprep.mubr.msk.f32.mxu1 %vm339_vm0, %v275_v45  ;;  %v1539_v45 = vld [vmem:[%s2825_s0 + $0x221] ss:$2 sm:$0xff]  ;;  %v316_v42 = vmax.f32 %v1494_v38, %v1558_v39 }
  0x24   :  { %1860 = vmatmul.mubr.msk.f32.gmra.mrb[12].mxu0 %vm339_vm0, %v276_v50  ;;  %v297_v47 = vmax.f32 %v1475_v44, %v1539_v45  ;;  %v1496_v44 = vld [vmem:[%s2825_s0 + $0x370] ss:$2 sm:$0xff]  ;;  %v1560_v45 = vld [vmem:[%s2825_s0 + $0x371] ss:$2 sm:$0xff] }
  0x25   :  { %1862 = vmatprep.mubr.msk.f32.mxu0 %vm339_vm0, %v277_v51  ;;  %v318_v48 = vmax.f32 %v1496_v44, %v1560_v45 }
  0x26   :  { %1960 = vmatmul.mubr.msk.f32.gmra.mrb[12].mxu1 %vm339_vm0, %v276_v50  ;;  %v1477_v50 = vld [vmem:[%s2825_s0 + $0x240] ss:$2 sm:$0xff] }
  0x27   :  { %1962 = vmatprep.mubr.msk.f32.mxu1 %vm339_vm0, %v277_v51  ;;  %v1541_v51 = vld [vmem:[%s2825_s0 + $0x241] ss:$2 sm:$0xff] }
  0x28   :  { %1863 = vmatmul.mubr.msk.f32.gmra.mrb[14].mxu0 %vm339_vm0, %v278_v56  ;;  %v299_v53 = vmax.f32 %v1477_v50, %v1541_v51  ;;  %v1498_v50 = vld [vmem:[%s2825_s0 + $0x390] ss:$2 sm:$0xff]  ;;  %v1562_v51 = vld [vmem:[%s2825_s0 + $0x391] ss:$2 sm:$0xff] }
  0x29   :  { %1865 = vmatprep.mubr.msk.f32.mxu0 %vm339_vm0, %v279_v57  ;;  %v320_v54 = vmax.f32 %v1498_v50, %v1562_v51 }
  0x2a   :  { %1963 = vmatmul.mubr.msk.f32.gmra.mrb[14].mxu1 %vm339_vm0, %v278_v56  ;;  %v1479_v56 = vld [vmem:[%s2825_s0 + $0x260] ss:$2 sm:$0xff] }
  0x2b   :  { %1965 = vmatprep.mubr.msk.f32.mxu1 %vm339_vm0, %v279_v57  ;;  %v1543_v57 = vld [vmem:[%s2825_s0 + $0x261] ss:$2 sm:$0xff] }
  0x2c   :  { %1866 = vmatmul.mubr.msk.f32.gmra.mrb[16].mxu0 %vm339_vm0, %v280_v62  ;;  %v301_v59 = vmax.f32 %v1479_v56, %v1543_v57  ;;  %v1500_v56 = vld [vmem:[%s2825_s0 + $0x3b0] ss:$2 sm:$0xff]  ;;  %v1564_v57 = vld [vmem:[%s2825_s0 + $0x3b1] ss:$2 sm:$0xff] }
  0x2d   :  { %1868 = vmatprep.mubr.msk.f32.mxu0 %vm339_vm0, %v281_v63  ;;  %v322_v60 = vmax.f32 %v1500_v56, %v1564_v57 }
  0x2e   :  { %1966 = vmatmul.mubr.msk.f32.gmra.mrb[16].mxu1 %vm339_vm0, %v280_v62  ;;  %v1481_v62 = vld [vmem:[%s2825_s0 + $0x280] ss:$2 sm:$0xff] }
  0x2f   :  { %1968 = vmatprep.mubr.msk.f32.mxu1 %vm339_vm0, %v281_v63  ;;  %v1545_v63 = vld [vmem:[%s2825_s0 + $0x281] ss:$2 sm:$0xff] }
  0x30   :  { %1869 = vmatmul.mubr.msk.f32.gmra.mrb[18].mxu0 %vm339_vm0, %v282_v4  ;;  %v303_v1 = vmax.f32 %v1481_v62, %v1545_v63  ;;  %v1502_v62 = vld [vmem:[%s2825_s0 + $0x3d0] ss:$2 sm:$0xff]  ;;  %v1566_v63 = vld [vmem:[%s2825_s0 + $0x3d1] ss:$2 sm:$0xff] }
  0x31   :  { %1871 = vmatprep.mubr.msk.f32.mxu0 %vm339_vm0, %v283_v5  ;;  %v324_v2 = vmax.f32 %v1502_v62, %v1566_v63 }
  0x32   :  { %1969 = vmatmul.mubr.msk.f32.gmra.mrb[18].mxu1 %vm339_vm0, %v282_v4  ;;  %v1483_v4 = vld [vmem:[%s2825_s0 + $0x2a0] ss:$2 sm:$0xff] }
  0x33   :  { %1971 = vmatprep.mubr.msk.f32.mxu1 %vm339_vm0, %v283_v5  ;;  %v1547_v5 = vld [vmem:[%s2825_s0 + $0x2a1] ss:$2 sm:$0xff] }
  0x34   :  { %1872 = vmatmul.mubr.msk.f32.gmra.mrb[20].mxu0 %vm339_vm0, %v284_v10  ;;  %v305_v7 = vmax.f32 %v1483_v4, %v1547_v5  ;;  %v1504_v4 = vld [vmem:[%s2825_s0 + $0x3f0] ss:$2 sm:$0xff]  ;;  %v1568_v5 = vld [vmem:[%s2825_s0 + $0x3f1] ss:$2 sm:$0xff] }
  0x35   :  { %1874 = vmatprep.mubr.msk.f32.mxu0 %vm339_vm0, %v285_v11 }
  0x36   :  { %1972 = vmatmul.mubr.msk.f32.gmra.mrb[20].mxu1 %vm339_vm0, %v284_v10  ;;  %v1485_v10 = vld [vmem:[%s2825_s0 + $0x2c0] ss:$2 sm:$0xff] }
  0x37   :  { %1974 = vmatprep.mubr.msk.f32.mxu1 %vm339_vm0, %v285_v11  ;;  %v1549_v11 = vld [vmem:[%s2825_s0 + $0x2c1] ss:$2 sm:$0xff] }
  0x38   :  { %1875 = vmatmul.mubr.msk.f32.gmra.mrb[22].mxu0 %vm339_vm0, %v286_v16  ;;  %v307_v13 = vmax.f32 %v1485_v10, %v1549_v11 }
  0x39   :  { %1877 = vmatprep.mubr.msk.f32.mxu0 %vm339_vm0, %v287_v17 }
  0x3a   :  { %1975 = vmatmul.mubr.msk.f32.gmra.mrb[22].mxu1 %vm339_vm0, %v286_v16  ;;  %v1487_v16 = vld [vmem:[%s2825_s0 + $0x2e0] ss:$2 sm:$0xff] }
  0x3b   :  { %1977 = vmatprep.mubr.msk.f32.mxu1 %vm339_vm0, %v287_v17  ;;  %v1551_v17 = vld [vmem:[%s2825_s0 + $0x2e1] ss:$2 sm:$0xff] }
  0x3c   :  { %1878 = vmatmul.mubr.msk.f32.gmra.mrb[24].mxu0 %vm339_vm0, %v288_v22  ;;  %v309_v19 = vmax.f32 %v1487_v16, %v1551_v17 }
  0x3d   :  { %1880 = vmatprep.mubr.msk.f32.mxu0 %vm339_vm0, %v289_v23 }
  0x3e   :  { %1978 = vmatmul.mubr.msk.f32.gmra.mrb[24].mxu1 %vm339_vm0, %v288_v22  ;;  %v1489_v22 = vld [vmem:[%s2825_s0 + $0x300] ss:$2 sm:$0xff] }
  0x3f   :  { %1980 = vmatprep.mubr.msk.f32.mxu1 %vm339_vm0, %v289_v23  ;;  %v1553_v23 = vld [vmem:[%s2825_s0 + $0x301] ss:$2 sm:$0xff] }
  0x40   :  { %1881 = vmatmul.mubr.msk.f32.gmra.mrb[26].mxu0 %vm339_vm0, %v290_v28  ;;  %v311_v25 = vmax.f32 %v1489_v22, %v1553_v23 }
  0x41   :  { %1883 = vmatprep.mubr.msk.f32.mxu0 %vm339_vm0, %v291_v29 }
  0x42   :  { %1981 = vmatmul.mubr.msk.f32.gmra.mrb[26].mxu1 %vm339_vm0, %v290_v28  ;;  %v1491_v28 = vld [vmem:[%s2825_s0 + $0x320] ss:$2 sm:$0xff] }
  0x43   :  { %1983 = vmatprep.mubr.msk.f32.mxu1 %vm339_vm0, %v291_v29  ;;  %v1555_v29 = vld [vmem:[%s2825_s0 + $0x321] ss:$2 sm:$0xff] }
  0x44   :  { %1884 = vmatmul.mubr.msk.f32.gmra.mrb[28].mxu0 %vm339_vm0, %v292_v34  ;;  %v313_v31 = vmax.f32 %v1491_v28, %v1555_v29 }
  0x45   :  { %1886 = vmatprep.mubr.msk.f32.mxu0 %vm339_vm0, %v293_v35 }
  0x46   :  { %1984 = vmatmul.mubr.msk.f32.gmra.mrb[28].mxu1 %vm339_vm0, %v292_v34  ;;  %v1493_v34 = vld [vmem:[%s2825_s0 + $0x340] ss:$2 sm:$0xff] }
  0x47   :  { %1986 = vmatprep.mubr.msk.f32.mxu1 %vm339_vm0, %v293_v35  ;;  %v1557_v35 = vld [vmem:[%s2825_s0 + $0x341] ss:$2 sm:$0xff] }
  0x48   :  { %1887 = vmatmul.mubr.msk.f32.gmra.mrb[30].mxu0 %vm339_vm0, %v294_v40  ;;  %v315_v37 = vmax.f32 %v1493_v34, %v1557_v35 }
  0x49   :  { %1889 = vmatprep.mubr.msk.f32.mxu0 %vm339_vm0, %v295_v41 }
  0x4a   :  { %1987 = vmatmul.mubr.msk.f32.gmra.mrb[30].mxu1 %vm339_vm0, %v294_v40  ;;  %v1495_v40 = vld [vmem:[%s2825_s0 + $0x360] ss:$2 sm:$0xff] }
  0x4b   :  { %1989 = vmatprep.mubr.msk.f32.mxu1 %vm339_vm0, %v295_v41  ;;  %v1559_v41 = vld [vmem:[%s2825_s0 + $0x361] ss:$2 sm:$0xff] }
  0x4c   :  { %1890 = vmatmul.mubr.msk.f32.gmra.mrb[32].mxu0 %vm339_vm0, %v296_v46  ;;  %v317_v43 = vmax.f32 %v1495_v40, %v1559_v41 }
  0x4d   :  { %1892 = vmatprep.mubr.msk.f32.mxu0 %vm339_vm0, %v297_v47 }
  0x4e   :  { %1990 = vmatmul.mubr.msk.f32.gmra.mrb[32].mxu1 %vm339_vm0, %v296_v46  ;;  %v1497_v46 = vld [vmem:[%s2825_s0 + $0x380] ss:$2 sm:$0xff] }
  0x4f   :  { %1992 = vmatprep.mubr.msk.f32.mxu1 %vm339_vm0, %v297_v47  ;;  %v1561_v47 = vld [vmem:[%s2825_s0 + $0x381] ss:$2 sm:$0xff] }
  0x50   :  { %1893 = vmatmul.mubr.msk.f32.gmra.mrb[34].mxu0 %vm339_vm0, %v298_v52  ;;  %v319_v49 = vmax.f32 %v1497_v46, %v1561_v47 }
  0x51   :  { %1895 = vmatprep.mubr.msk.f32.mxu0 %vm339_vm0, %v299_v53 }
  0x52   :  { %1993 = vmatmul.mubr.msk.f32.gmra.mrb[34].mxu1 %vm339_vm0, %v298_v52  ;;  %v1499_v52 = vld [vmem:[%s2825_s0 + $0x3a0] ss:$2 sm:$0xff] }
  0x53   :  { %1995 = vmatprep.mubr.msk.f32.mxu1 %vm339_vm0, %v299_v53  ;;  %v1563_v53 = vld [vmem:[%s2825_s0 + $0x3a1] ss:$2 sm:$0xff] }
  0x54   :  { %1896 = vmatmul.mubr.msk.f32.gmra.mrb[36].mxu0 %vm339_vm0, %v300_v58  ;;  %v321_v55 = vmax.f32 %v1499_v52, %v1563_v53 }
  0x55   :  { %1898 = vmatprep.mubr.msk.f32.mxu0 %vm339_vm0, %v301_v59 }
  0x56   :  { %1996 = vmatmul.mubr.msk.f32.gmra.mrb[36].mxu1 %vm339_vm0, %v300_v58  ;;  %v1501_v58 = vld [vmem:[%s2825_s0 + $0x3c0] ss:$2 sm:$0xff] }
  0x57   :  { %1998 = vmatprep.mubr.msk.f32.mxu1 %vm339_vm0, %v301_v59  ;;  %v1565_v59 = vld [vmem:[%s2825_s0 + $0x3c1] ss:$2 sm:$0xff] }
  0x58   :  { %1899 = vmatmul.mubr.msk.f32.gmra.mrb[38].mxu0 %vm339_vm0, %v302_v0  ;;  %v323_v61 = vmax.f32 %v1501_v58, %v1565_v59 }
  0x59   :  { %1901 = vmatprep.mubr.msk.f32.mxu0 %vm339_vm0, %v303_v1 }
  0x5a   :  { %1999 = vmatmul.mubr.msk.f32.gmra.mrb[38].mxu1 %vm339_vm0, %v302_v0  ;;  %v1503_v0 = vld [vmem:[%s2825_s0 + $0x3e0] ss:$2 sm:$0xff] }
  0x5b   :  { %2001 = vmatprep.mubr.msk.f32.mxu1 %vm339_vm0, %v303_v1  ;;  %v1567_v1 = vld [vmem:[%s2825_s0 + $0x3e1] ss:$2 sm:$0xff] }
  0x5c   :  { %1902 = vmatmul.mubr.msk.f32.gmra.mrb[40].mxu0 %vm339_vm0, %v304_v6  ;;  %v325_v3 = vmax.f32 %v1503_v0, %v1567_v1 }
  0x5d   :  { %1904 = vmatprep.mubr.msk.f32.mxu0 %vm339_vm0, %v305_v7 }
  0x5e   :  { %2002 = vmatmul.mubr.msk.f32.gmra.mrb[40].mxu1 %vm339_vm0, %v304_v6  ;;  %v326_v6 = vmax.f32 %v1504_v4, %v1568_v5 }
  0x5f   :  { %2004 = vmatprep.mubr.msk.f32.mxu1 %vm339_vm0, %v305_v7 }
  0x60   :  { %1905 = vmatmul.mubr.msk.f32.gmra.mrb[42].mxu0 %vm339_vm0, %v306_v12 }
  0x61   :  { %1907 = vmatprep.mubr.msk.f32.mxu0 %vm339_vm0, %v307_v13 }
  0x62   :  { %2005 = vmatmul.mubr.msk.f32.gmra.mrb[42].mxu1 %vm339_vm0, %v306_v12 }
  0x63   :  { %2007 = vmatprep.mubr.msk.f32.mxu1 %vm339_vm0, %v307_v13 }
  0x64   :  { %1908 = vmatmul.mubr.msk.f32.gmra.mrb[44].mxu0 %vm339_vm0, %v308_v18 }
  0x65   :  { %1910 = vmatprep.mubr.msk.f32.mxu0 %vm339_vm0, %v309_v19 }
  0x66   :  { %2008 = vmatmul.mubr.msk.f32.gmra.mrb[44].mxu1 %vm339_vm0, %v308_v18 }
  0x67   :  { %2010 = vmatprep.mubr.msk.f32.mxu1 %vm339_vm0, %v309_v19 }
  0x68   :  { %1911 = vmatmul.mubr.msk.f32.gmra.mrb[46].mxu0 %vm339_vm0, %v310_v24 }
  0x69   :  { %1913 = vmatprep.mubr.msk.f32.mxu0 %vm339_vm0, %v311_v25 }
  0x6a   :  { %2011 = vmatmul.mubr.msk.f32.gmra.mrb[46].mxu1 %vm339_vm0, %v310_v24 }
  0x6b   :  { %2013 = vmatprep.mubr.msk.f32.mxu1 %vm339_vm0, %v311_v25 }
  0x6c   :  { %1914 = vmatmul.mubr.msk.f32.gmra.mrb[48].mxu0 %vm339_vm0, %v312_v30 }
  0x6d   :  { %1916 = vmatprep.mubr.msk.f32.mxu0 %vm339_vm0, %v313_v31 }
  0x6e   :  { %2014 = vmatmul.mubr.msk.f32.gmra.mrb[48].mxu1 %vm339_vm0, %v312_v30 }
  0x6f   :  { %2016 = vmatprep.mubr.msk.f32.mxu1 %vm339_vm0, %v313_v31 }
  0x70   :  { %1917 = vmatmul.mubr.msk.f32.gmra.mrb[50].mxu0 %vm339_vm0, %v314_v36 }
  0x71   :  { %1919 = vmatprep.mubr.msk.f32.mxu0 %vm339_vm0, %v315_v37 }
  0x72   :  { %2017 = vmatmul.mubr.msk.f32.gmra.mrb[50].mxu1 %vm339_vm0, %v314_v36 }
  0x73   :  { %2019 = vmatprep.mubr.msk.f32.mxu1 %vm339_vm0, %v315_v37 }
  0x74   :  { %1920 = vmatmul.mubr.msk.f32.gmra.mrb[52].mxu0 %vm339_vm0, %v316_v42 }
  0x75   :  { %1922 = vmatprep.mubr.msk.f32.mxu0 %vm339_vm0, %v317_v43 }
  0x76   :  { %2020 = vmatmul.mubr.msk.f32.gmra.mrb[52].mxu1 %vm339_vm0, %v316_v42 }
  0x77   :  { %2022 = vmatprep.mubr.msk.f32.mxu1 %vm339_vm0, %v317_v43 }
  0x78   :  { %1923 = vmatmul.mubr.msk.f32.gmra.mrb[54].mxu0 %vm339_vm0, %v318_v48 }
  0x79   :  { %1925 = vmatprep.mubr.msk.f32.mxu0 %vm339_vm0, %v319_v49 }
  0x7a   :  { %2023 = vmatmul.mubr.msk.f32.gmra.mrb[54].mxu1 %vm339_vm0, %v318_v48 }
  0x7b   :  { %2025 = vmatprep.mubr.msk.f32.mxu1 %vm339_vm0, %v319_v49 }
  0x7c   :  { %1926 = vmatmul.mubr.msk.f32.gmra.mrb[56].mxu0 %vm339_vm0, %v320_v54 }
  0x7d   :  { %1928 = vmatprep.mubr.msk.f32.mxu0 %vm339_vm0, %v321_v55 }
  0x7e   :  { %2026 = vmatmul.mubr.msk.f32.gmra.mrb[56].mxu1 %vm339_vm0, %v320_v54 }
  0x7f   :  { %2028 = vmatprep.mubr.msk.f32.mxu1 %vm339_vm0, %v321_v55 }
  0x80   :  { %1929 = vmatmul.mubr.msk.f32.gmra.mrb[58].mxu0 %vm339_vm0, %v322_v60 }
  0x81   :  { %1931 = vmatprep.mubr.msk.f32.mxu0 %vm339_vm0, %v323_v61 }
  0x82   :  { %2029 = vmatmul.mubr.msk.f32.gmra.mrb[58].mxu1 %vm339_vm0, %v322_v60 }
  0x83   :  { %2031 = vmatprep.mubr.msk.f32.mxu1 %vm339_vm0, %v323_v61 }
  0x84   :  { %1932 = vmatmul.mubr.msk.f32.gmra.mrb[60].mxu0 %vm339_vm0, %v324_v2 }
  0x85   :  { %1934 = vmatprep.mubr.msk.f32.mxu0 %vm339_vm0, %v325_v3 }
  0x86   :  { %2032 = vmatmul.mubr.msk.f32.gmra.mrb[60].mxu1 %vm339_vm0, %v324_v2 }
  0x87   :  { %2034 = vmatprep.mubr.msk.f32.mxu1 %vm339_vm0, %v325_v3 }
  0x88   :  { %1935 = vmatmul.mubr.msk.f32.gmra.mrb[62].mxu0 %vm339_vm0, %v326_v6 }
  0x8a   :  { %2035 = vmatmul.mubr.msk.f32.gmra.mrb[62].mxu1 %vm339_vm0, %v326_v6 }
  0xdf   :  { %v1843_v7 = vpop.f32.mrb[0].mxu0 }
  0xe0   :  { %v598_v8 = vpop.f32.mrb[1].mxu0 }
  0xe1   :  { %v1943_v9 = vpop.f32.mrb[0].mxu1 }
  0xe2   :  { %v1310_v10 = vmax.f32 %v1843_v7, %v1943_v9  ;;  %v990_v11 = vpop.f32.mrb[1].mxu1 }
  0xe3   :  { %v1309_v12 = vmax.f32 %v598_v8, %v990_v11  ;;  %v1846_v13 = vpop.f32.mrb[2].mxu0 }
  0xe4   :  { %1375 = vst.msk [vmem:[%s2826_s1 + $0x8] sm:$0xff] %vm1373_vm7, %v1310_v10  ;;  %v608_v14 = vpop.f32.mrb[3].mxu0 }
  0xe5   :  { %1374 = vst.msk [vmem:[%s2826_s1] sm:$0xff] %vm1373_vm7, %v1309_v12  ;;  %v1946_v15 = vpop.f32.mrb[2].mxu1 }
  0xe6   :  { %v1312_v16 = vmax.f32 %v1846_v13, %v1946_v15  ;;  %v1000_v17 = vpop.f32.mrb[3].mxu1 }
  0xe7   :  { %v1311_v18 = vmax.f32 %v608_v14, %v1000_v17  ;;  %v1849_v19 = vpop.f32.mrb[4].mxu0 }
  0xe8   :  { %1377 = vst.msk [vmem:[%s2826_s1 + $0x18] sm:$0xff] %vm1373_vm7, %v1312_v16  ;;  %v618_v20 = vpop.f32.mrb[5].mxu0 }
  0xe9   :  { %1376 = vst.msk [vmem:[%s2826_s1 + $0x10] sm:$0xff] %vm1373_vm7, %v1311_v18  ;;  %v1949_v21 = vpop.f32.mrb[4].mxu1 }
  0xea   :  { %v1314_v22 = vmax.f32 %v1849_v19, %v1949_v21  ;;  %v1010_v23 = vpop.f32.mrb[5].mxu1 }
  0xeb   :  { %v1313_v24 = vmax.f32 %v618_v20, %v1010_v23  ;;  %v1852_v25 = vpop.f32.mrb[6].mxu0 }
  0xec   :  { %1379 = vst.msk [vmem:[%s2826_s1 + $0x28] sm:$0xff] %vm1373_vm7, %v1314_v22  ;;  %v628_v26 = vpop.f32.mrb[7].mxu0 }
  0xed   :  { %1378 = vst.msk [vmem:[%s2826_s1 + $0x20] sm:$0xff] %vm1373_vm7, %v1313_v24  ;;  %v1952_v27 = vpop.f32.mrb[6].mxu1 }
  0xee   :  { %v1316_v28 = vmax.f32 %v1852_v25, %v1952_v27  ;;  %v1020_v29 = vpop.f32.mrb[7].mxu1 }
  0xef   :  { %v1315_v30 = vmax.f32 %v628_v26, %v1020_v29  ;;  %v1855_v31 = vpop.f32.mrb[8].mxu0 }
  0xf0   :  { %1381 = vst.msk [vmem:[%s2826_s1 + $0x38] sm:$0xff] %vm1373_vm7, %v1316_v28  ;;  %v638_v32 = vpop.f32.mrb[9].mxu0 }
  0xf1   :  { %1380 = vst.msk [vmem:[%s2826_s1 + $0x30] sm:$0xff] %vm1373_vm7, %v1315_v30  ;;  %v1955_v33 = vpop.f32.mrb[8].mxu1 }
  0xf2   :  { %v1318_v34 = vmax.f32 %v1855_v31, %v1955_v33  ;;  %v1030_v35 = vpop.f32.mrb[9].mxu1 }
  0xf3   :  { %v1317_v36 = vmax.f32 %v638_v32, %v1030_v35  ;;  %v1858_v37 = vpop.f32.mrb[10].mxu0 }
  0xf4   :  { %1383 = vst.msk [vmem:[%s2826_s1 + $0x48] sm:$0xff] %vm1373_vm7, %v1318_v34  ;;  %v648_v38 = vpop.f32.mrb[11].mxu0 }
  0xf5   :  { %1382 = vst.msk [vmem:[%s2826_s1 + $0x40] sm:$0xff] %vm1373_vm7, %v1317_v36  ;;  %v1958_v39 = vpop.f32.mrb[10].mxu1 }
  0xf6   :  { %v1320_v40 = vmax.f32 %v1858_v37, %v1958_v39  ;;  %v1040_v41 = vpop.f32.mrb[11].mxu1 }
  0xf7   :  { %v1319_v42 = vmax.f32 %v648_v38, %v1040_v41  ;;  %v1861_v43 = vpop.f32.mrb[12].mxu0 }
  0xf8   :  { %1385 = vst.msk [vmem:[%s2826_s1 + $0x58] sm:$0xff] %vm1373_vm7, %v1320_v40  ;;  %v658_v44 = vpop.f32.mrb[13].mxu0 }
  0xf9   :  { %1384 = vst.msk [vmem:[%s2826_s1 + $0x50] sm:$0xff] %vm1373_vm7, %v1319_v42  ;;  %v1961_v45 = vpop.f32.mrb[12].mxu1 }
  0xfa   :  { %v1322_v46 = vmax.f32 %v1861_v43, %v1961_v45  ;;  %v1050_v47 = vpop.f32.mrb[13].mxu1 }
  0xfb   :  { %v1321_v48 = vmax.f32 %v658_v44, %v1050_v47  ;;  %v1864_v49 = vpop.f32.mrb[14].mxu0 }
  0xfc   :  { %1387 = vst.msk [vmem:[%s2826_s1 + $0x68] sm:$0xff] %vm1373_vm7, %v1322_v46  ;;  %v668_v50 = vpop.f32.mrb[15].mxu0 }
  0xfd   :  { %1386 = vst.msk [vmem:[%s2826_s1 + $0x60] sm:$0xff] %vm1373_vm7, %v1321_v48  ;;  %v1964_v51 = vpop.f32.mrb[14].mxu1 }
  0xfe   :  { %v1324_v52 = vmax.f32 %v1864_v49, %v1964_v51  ;;  %v1060_v53 = vpop.f32.mrb[15].mxu1 }
  0xff   :  { %v1323_v54 = vmax.f32 %v668_v50, %v1060_v53  ;;  %v1867_v55 = vpop.f32.mrb[16].mxu0 }
 0x100   :  { %1389 = vst.msk [vmem:[%s2826_s1 + $0x78] sm:$0xff] %vm1373_vm7, %v1324_v52  ;;  %v678_v56 = vpop.f32.mrb[17].mxu0 }
 0x101   :  { %1388 = vst.msk [vmem:[%s2826_s1 + $0x70] sm:$0xff] %vm1373_vm7, %v1323_v54  ;;  %v1967_v57 = vpop.f32.mrb[16].mxu1 }
 0x102   :  { %v1326_v58 = vmax.f32 %v1867_v55, %v1967_v57  ;;  %v1070_v59 = vpop.f32.mrb[17].mxu1 }
 0x103   :  { %v1325_v60 = vmax.f32 %v678_v56, %v1070_v59  ;;  %v1870_v61 = vpop.f32.mrb[18].mxu0 }
 0x104   :  { %1391 = vst.msk [vmem:[%s2826_s1 + $0x88] sm:$0xff] %vm1373_vm7, %v1326_v58  ;;  %v688_v62 = vpop.f32.mrb[19].mxu0 }
 0x105   :  { %1390 = vst.msk [vmem:[%s2826_s1 + $0x80] sm:$0xff] %vm1373_vm7, %v1325_v60  ;;  %v1970_v63 = vpop.f32.mrb[18].mxu1 }
 0x106   :  { %v1328_v0 = vmax.f32 %v1870_v61, %v1970_v63  ;;  %v1080_v1 = vpop.f32.mrb[19].mxu1 }
 0x107   :  { %v1327_v2 = vmax.f32 %v688_v62, %v1080_v1  ;;  %v1873_v3 = vpop.f32.mrb[20].mxu0 }
 0x108   :  { %1393 = vst.msk [vmem:[%s2826_s1 + $0x98] sm:$0xff] %vm1373_vm7, %v1328_v0  ;;  %v698_v4 = vpop.f32.mrb[21].mxu0 }
 0x109   :  { %1392 = vst.msk [vmem:[%s2826_s1 + $0x90] sm:$0xff] %vm1373_vm7, %v1327_v2  ;;  %v1973_v5 = vpop.f32.mrb[20].mxu1 }
 0x10a   :  { %v1330_v6 = vmax.f32 %v1873_v3, %v1973_v5  ;;  %v1090_v7 = vpop.f32.mrb[21].mxu1 }
 0x10b   :  { %v1329_v8 = vmax.f32 %v698_v4, %v1090_v7  ;;  %v1876_v9 = vpop.f32.mrb[22].mxu0 }
 0x10c   :  { %1395 = vst.msk [vmem:[%s2826_s1 + $0xa8] sm:$0xff] %vm1373_vm7, %v1330_v6  ;;  %v708_v10 = vpop.f32.mrb[23].mxu0 }
 0x10d   :  { %1394 = vst.msk [vmem:[%s2826_s1 + $0xa0] sm:$0xff] %vm1373_vm7, %v1329_v8  ;;  %v1976_v11 = vpop.f32.mrb[22].mxu1 }
 0x10e   :  { %v1332_v12 = vmax.f32 %v1876_v9, %v1976_v11  ;;  %v1100_v13 = vpop.f32.mrb[23].mxu1 }
 0x10f   :  { %v1331_v14 = vmax.f32 %v708_v10, %v1100_v13  ;;  %v1879_v15 = vpop.f32.mrb[24].mxu0 }
 0x110   :  { %1397 = vst.msk [vmem:[%s2826_s1 + $0xb8] sm:$0xff] %vm1373_vm7, %v1332_v12  ;;  %v718_v16 = vpop.f32.mrb[25].mxu0 }
 0x111   :  { %1396 = vst.msk [vmem:[%s2826_s1 + $0xb0] sm:$0xff] %vm1373_vm7, %v1331_v14  ;;  %v1979_v17 = vpop.f32.mrb[24].mxu1 }
 0x112   :  { %v1334_v18 = vmax.f32 %v1879_v15, %v1979_v17  ;;  %v1110_v19 = vpop.f32.mrb[25].mxu1 }
 0x113   :  { %v1333_v20 = vmax.f32 %v718_v16, %v1110_v19  ;;  %v1882_v21 = vpop.f32.mrb[26].mxu0 }
 0x114   :  { %1399 = vst.msk [vmem:[%s2826_s1 + $0xc8] sm:$0xff] %vm1373_vm7, %v1334_v18  ;;  %v728_v22 = vpop.f32.mrb[27].mxu0 }
 0x115   :  { %1398 = vst.msk [vmem:[%s2826_s1 + $0xc0] sm:$0xff] %vm1373_vm7, %v1333_v20  ;;  %v1982_v23 = vpop.f32.mrb[26].mxu1 }
 0x116   :  { %v1336_v24 = vmax.f32 %v1882_v21, %v1982_v23  ;;  %v1120_v25 = vpop.f32.mrb[27].mxu1 }
 0x117   :  { %v1335_v26 = vmax.f32 %v728_v22, %v1120_v25  ;;  %v1885_v27 = vpop.f32.mrb[28].mxu0 }
 0x118   :  { %1401 = vst.msk [vmem:[%s2826_s1 + $0xd8] sm:$0xff] %vm1373_vm7, %v1336_v24  ;;  %v738_v28 = vpop.f32.mrb[29].mxu0 }
 0x119   :  { %1400 = vst.msk [vmem:[%s2826_s1 + $0xd0] sm:$0xff] %vm1373_vm7, %v1335_v26  ;;  %v1985_v29 = vpop.f32.mrb[28].mxu1 }
 0x11a   :  { %v1338_v30 = vmax.f32 %v1885_v27, %v1985_v29  ;;  %v1130_v31 = vpop.f32.mrb[29].mxu1 }
 0x11b   :  { %v1337_v32 = vmax.f32 %v738_v28, %v1130_v31  ;;  %v1888_v33 = vpop.f32.mrb[30].mxu0 }
 0x11c   :  { %1403 = vst.msk [vmem:[%s2826_s1 + $0xe8] sm:$0xff] %vm1373_vm7, %v1338_v30  ;;  %v748_v34 = vpop.f32.mrb[31].mxu0 }
 0x11d   :  { %1402 = vst.msk [vmem:[%s2826_s1 + $0xe0] sm:$0xff] %vm1373_vm7, %v1337_v32  ;;  %v1988_v35 = vpop.f32.mrb[30].mxu1 }
 0x11e   :  { %v1340_v36 = vmax.f32 %v1888_v33, %v1988_v35  ;;  %v1140_v37 = vpop.f32.mrb[31].mxu1 }
 0x11f   :  { %v1339_v38 = vmax.f32 %v748_v34, %v1140_v37  ;;  %v1891_v39 = vpop.f32.mrb[32].mxu0 }
 0x120   :  { %1405 = vst.msk [vmem:[%s2826_s1 + $0xf8] sm:$0xff] %vm1373_vm7, %v1340_v36  ;;  %v758_v40 = vpop.f32.mrb[33].mxu0 }
 0x121   :  { %1404 = vst.msk [vmem:[%s2826_s1 + $0xf0] sm:$0xff] %vm1373_vm7, %v1339_v38  ;;  %v1991_v41 = vpop.f32.mrb[32].mxu1 }
 0x122   :  { %v1342_v42 = vmax.f32 %v1891_v39, %v1991_v41  ;;  %v1150_v43 = vpop.f32.mrb[33].mxu1 }
 0x123   :  { %v1341_v44 = vmax.f32 %v758_v40, %v1150_v43  ;;  %v1894_v45 = vpop.f32.mrb[34].mxu0 }
 0x124   :  { %1407 = vst.msk [vmem:[%s2826_s1 + $0x108] sm:$0xff] %vm1373_vm7, %v1342_v42  ;;  %v768_v46 = vpop.f32.mrb[35].mxu0 }
 0x125   :  { %1406 = vst.msk [vmem:[%s2826_s1 + $0x100] sm:$0xff] %vm1373_vm7, %v1341_v44  ;;  %v1994_v47 = vpop.f32.mrb[34].mxu1 }
 0x126   :  { %v1344_v48 = vmax.f32 %v1894_v45, %v1994_v47  ;;  %v1160_v49 = vpop.f32.mrb[35].mxu1 }
 0x127   :  { %v1343_v50 = vmax.f32 %v768_v46, %v1160_v49  ;;  %v1897_v51 = vpop.f32.mrb[36].mxu0 }
 0x128   :  { %1409 = vst.msk [vmem:[%s2826_s1 + $0x118] sm:$0xff] %vm1373_vm7, %v1344_v48  ;;  %v778_v52 = vpop.f32.mrb[37].mxu0 }
 0x129   :  { %1408 = vst.msk [vmem:[%s2826_s1 + $0x110] sm:$0xff] %vm1373_vm7, %v1343_v50  ;;  %v1997_v53 = vpop.f32.mrb[36].mxu1 }
 0x12a   :  { %v1346_v54 = vmax.f32 %v1897_v51, %v1997_v53  ;;  %v1170_v55 = vpop.f32.mrb[37].mxu1 }
 0x12b   :  { %v1345_v56 = vmax.f32 %v778_v52, %v1170_v55  ;;  %v1900_v57 = vpop.f32.mrb[38].mxu0 }
 0x12c   :  { %1411 = vst.msk [vmem:[%s2826_s1 + $0x128] sm:$0xff] %vm1373_vm7, %v1346_v54  ;;  %v788_v58 = vpop.f32.mrb[39].mxu0 }
 0x12d   :  { %1410 = vst.msk [vmem:[%s2826_s1 + $0x120] sm:$0xff] %vm1373_vm7, %v1345_v56  ;;  %v2000_v59 = vpop.f32.mrb[38].mxu1 }
 0x12e   :  { %v1348_v60 = vmax.f32 %v1900_v57, %v2000_v59  ;;  %v1180_v61 = vpop.f32.mrb[39].mxu1 }
 0x12f   :  { %v1347_v62 = vmax.f32 %v788_v58, %v1180_v61  ;;  %v1903_v63 = vpop.f32.mrb[40].mxu0 }
 0x130   :  { %1413 = vst.msk [vmem:[%s2826_s1 + $0x138] sm:$0xff] %vm1373_vm7, %v1348_v60  ;;  %v798_v0 = vpop.f32.mrb[41].mxu0 }
 0x131   :  { %1412 = vst.msk [vmem:[%s2826_s1 + $0x130] sm:$0xff] %vm1373_vm7, %v1347_v62  ;;  %v2003_v1 = vpop.f32.mrb[40].mxu1 }
 0x132   :  { %v1350_v2 = vmax.f32 %v1903_v63, %v2003_v1  ;;  %v1190_v3 = vpop.f32.mrb[41].mxu1 }
 0x133   :  { %v1349_v4 = vmax.f32 %v798_v0, %v1190_v3  ;;  %v1906_v5 = vpop.f32.mrb[42].mxu0 }
 0x134   :  { %1415 = vst.msk [vmem:[%s2826_s1 + $0x148] sm:$0xff] %vm1373_vm7, %v1350_v2  ;;  %v808_v6 = vpop.f32.mrb[43].mxu0 }
 0x135   :  { %1414 = vst.msk [vmem:[%s2826_s1 + $0x140] sm:$0xff] %vm1373_vm7, %v1349_v4  ;;  %v2006_v7 = vpop.f32.mrb[42].mxu1 }
 0x136   :  { %v1352_v8 = vmax.f32 %v1906_v5, %v2006_v7  ;;  %v1200_v9 = vpop.f32.mrb[43].mxu1 }
 0x137   :  { %v1351_v10 = vmax.f32 %v808_v6, %v1200_v9  ;;  %v1909_v11 = vpop.f32.mrb[44].mxu0 }
 0x138   :  { %1417 = vst.msk [vmem:[%s2826_s1 + $0x158] sm:$0xff] %vm1373_vm7, %v1352_v8  ;;  %v818_v12 = vpop.f32.mrb[45].mxu0 }
 0x139   :  { %1416 = vst.msk [vmem:[%s2826_s1 + $0x150] sm:$0xff] %vm1373_vm7, %v1351_v10  ;;  %v2009_v13 = vpop.f32.mrb[44].mxu1 }
 0x13a   :  { %v1354_v14 = vmax.f32 %v1909_v11, %v2009_v13  ;;  %v1210_v15 = vpop.f32.mrb[45].mxu1 }
 0x13b   :  { %v1353_v16 = vmax.f32 %v818_v12, %v1210_v15  ;;  %v1912_v17 = vpop.f32.mrb[46].mxu0 }
 0x13c   :  { %1419 = vst.msk [vmem:[%s2826_s1 + $0x168] sm:$0xff] %vm1373_vm7, %v1354_v14  ;;  %v828_v18 = vpop.f32.mrb[47].mxu0 }
 0x13d   :  { %1418 = vst.msk [vmem:[%s2826_s1 + $0x160] sm:$0xff] %vm1373_vm7, %v1353_v16  ;;  %v2012_v19 = vpop.f32.mrb[46].mxu1 }
 0x13e   :  { %v1356_v20 = vmax.f32 %v1912_v17, %v2012_v19  ;;  %v1220_v21 = vpop.f32.mrb[47].mxu1 }
 0x13f   :  { %v1355_v22 = vmax.f32 %v828_v18, %v1220_v21  ;;  %v1915_v23 = vpop.f32.mrb[48].mxu0 }
 0x140   :  { %1421 = vst.msk [vmem:[%s2826_s1 + $0x178] sm:$0xff] %vm1373_vm7, %v1356_v20  ;;  %v838_v24 = vpop.f32.mrb[49].mxu0 }
 0x141   :  { %1420 = vst.msk [vmem:[%s2826_s1 + $0x170] sm:$0xff] %vm1373_vm7, %v1355_v22  ;;  %v2015_v25 = vpop.f32.mrb[48].mxu1 }
 0x142   :  { %v1358_v26 = vmax.f32 %v1915_v23, %v2015_v25  ;;  %v1230_v27 = vpop.f32.mrb[49].mxu1 }
 0x143   :  { %v1357_v28 = vmax.f32 %v838_v24, %v1230_v27  ;;  %v1918_v29 = vpop.f32.mrb[50].mxu0 }
 0x144   :  { %1423 = vst.msk [vmem:[%s2826_s1 + $0x188] sm:$0xff] %vm1373_vm7, %v1358_v26  ;;  %v848_v30 = vpop.f32.mrb[51].mxu0 }
 0x145   :  { %1422 = vst.msk [vmem:[%s2826_s1 + $0x180] sm:$0xff] %vm1373_vm7, %v1357_v28  ;;  %v2018_v31 = vpop.f32.mrb[50].mxu1 }
 0x146   :  { %v1360_v32 = vmax.f32 %v1918_v29, %v2018_v31  ;;  %v1240_v33 = vpop.f32.mrb[51].mxu1 }
 0x147   :  { %v1359_v34 = vmax.f32 %v848_v30, %v1240_v33  ;;  %v1921_v35 = vpop.f32.mrb[52].mxu0 }
 0x148   :  { %1425 = vst.msk [vmem:[%s2826_s1 + $0x198] sm:$0xff] %vm1373_vm7, %v1360_v32  ;;  %v858_v36 = vpop.f32.mrb[53].mxu0 }
 0x149   :  { %1424 = vst.msk [vmem:[%s2826_s1 + $0x190] sm:$0xff] %vm1373_vm7, %v1359_v34  ;;  %v2021_v37 = vpop.f32.mrb[52].mxu1 }
 0x14a   :  { %v1362_v38 = vmax.f32 %v1921_v35, %v2021_v37  ;;  %v1250_v39 = vpop.f32.mrb[53].mxu1 }
 0x14b   :  { %v1361_v40 = vmax.f32 %v858_v36, %v1250_v39  ;;  %v1924_v41 = vpop.f32.mrb[54].mxu0 }
 0x14c   :  { %1427 = vst.msk [vmem:[%s2826_s1 + $0x1a8] sm:$0xff] %vm1373_vm7, %v1362_v38  ;;  %v868_v42 = vpop.f32.mrb[55].mxu0 }
 0x14d   :  { %1426 = vst.msk [vmem:[%s2826_s1 + $0x1a0] sm:$0xff] %vm1373_vm7, %v1361_v40  ;;  %v2024_v43 = vpop.f32.mrb[54].mxu1 }
 0x14e   :  { %v1364_v44 = vmax.f32 %v1924_v41, %v2024_v43  ;;  %v1260_v45 = vpop.f32.mrb[55].mxu1 }
 0x14f   :  { %v1363_v46 = vmax.f32 %v868_v42, %v1260_v45  ;;  %v1927_v47 = vpop.f32.mrb[56].mxu0 }
 0x150   :  { %1429 = vst.msk [vmem:[%s2826_s1 + $0x1b8] sm:$0xff] %vm1373_vm7, %v1364_v44  ;;  %v878_v48 = vpop.f32.mrb[57].mxu0 }
 0x151   :  { %1428 = vst.msk [vmem:[%s2826_s1 + $0x1b0] sm:$0xff] %vm1373_vm7, %v1363_v46  ;;  %v2027_v49 = vpop.f32.mrb[56].mxu1 }
 0x152   :  { %v1366_v50 = vmax.f32 %v1927_v47, %v2027_v49  ;;  %v1270_v51 = vpop.f32.mrb[57].mxu1 }
 0x153   :  { %v1365_v52 = vmax.f32 %v878_v48, %v1270_v51  ;;  %v1930_v53 = vpop.f32.mrb[58].mxu0 }
 0x154   :  { %1431 = vst.msk [vmem:[%s2826_s1 + $0x1c8] sm:$0xff] %vm1373_vm7, %v1366_v50  ;;  %v888_v54 = vpop.f32.mrb[59].mxu0 }
 0x155   :  { %1430 = vst.msk [vmem:[%s2826_s1 + $0x1c0] sm:$0xff] %vm1373_vm7, %v1365_v52  ;;  %v2030_v55 = vpop.f32.mrb[58].mxu1 }
 0x156   :  { %v1368_v56 = vmax.f32 %v1930_v53, %v2030_v55  ;;  %v1280_v57 = vpop.f32.mrb[59].mxu1 }
 0x157   :  { %v1367_v58 = vmax.f32 %v888_v54, %v1280_v57  ;;  %v1933_v59 = vpop.f32.mrb[60].mxu0 }
 0x158   :  { %1433 = vst.msk [vmem:[%s2826_s1 + $0x1d8] sm:$0xff] %vm1373_vm7, %v1368_v56  ;;  %v898_v60 = vpop.f32.mrb[61].mxu0 }
 0x159   :  { %1432 = vst.msk [vmem:[%s2826_s1 + $0x1d0] sm:$0xff] %vm1373_vm7, %v1367_v58  ;;  %v2033_v61 = vpop.f32.mrb[60].mxu1 }
 0x15a   :  { %v1370_v62 = vmax.f32 %v1933_v59, %v2033_v61  ;;  %v1290_v63 = vpop.f32.mrb[61].mxu1 }
 0x15b   :  { %v1369_v0 = vmax.f32 %v898_v60, %v1290_v63  ;;  %v1936_v1 = vpop.f32.mrb[62].mxu0 }
 0x15c   :  { %1435 = vst.msk [vmem:[%s2826_s1 + $0x1e8] sm:$0xff] %vm1373_vm7, %v1370_v62  ;;  %v908_v2 = vpop.f32.mrb[63].mxu0 }
 0x15d   :  { %1434 = vst.msk [vmem:[%s2826_s1 + $0x1e0] sm:$0xff] %vm1373_vm7, %v1369_v0  ;;  %v2036_v3 = vpop.f32.mrb[62].mxu1 }
 0x15e   :  { %v1372_v4 = vmax.f32 %v1936_v1, %v2036_v3  ;;  %v1300_v5 = vpop.f32.mrb[63].mxu1 }
 0x15f   :  { %v1371_v6 = vmax.f32 %v908_v2, %v1300_v5 }
 0x160   :  { %1437 = vst.msk [vmem:[%s2826_s1 + $0x1f8] sm:$0xff] %vm1373_vm7, %v1372_v4 }
 0x161   :  { %1436 = vst.msk [vmem:[%s2826_s1 + $0x1f0] sm:$0xff] %vm1373_vm7, %v1371_v6 }

</bundles_post_ra>
